<compile_context>
chip_gen: v6e
topology: v6e:2x2x1
jax: 0.10.0
libtpu: 0.0.40
codegen_flags: <defaults>
</compile_context>

<pallas_src>
import functools
import math

import jax
import jax.numpy as jnp
import numpy as np
from jax.experimental import pallas as pl
from jax.experimental.pallas import tpu as pltpu


def compute_hough_parameters(H, W, theta_res=1.0, rho_res=1.0):
    numangle = int(math.ceil(180.0 / theta_res))
    D = math.sqrt((H - 1) ** 2 + (W - 1) ** 2)
    numrho = int(math.ceil(2.0 * D / rho_res) + 1)
    return numangle, numrho


def _round_half_away(x):
    # C round(): half away from zero (np.round / jnp.round are half-to-even).
    return np.where(x >= 0.0, np.floor(x + 0.5), np.ceil(x - 0.5))


@functools.lru_cache(maxsize=None)
def _rho_index_table_np(H, W, theta_res, rho_res):
    """ridx[i, y, x] = rho-bin read by pixel (y, x) at angle i (numpy, cached)."""
    numangle, numrho = compute_hough_parameters(H, W, theta_res, rho_res)
    itheta = math.pi * theta_res / 180.0
    thetas = np.arange(numangle, dtype=np.float64) * itheta
    xs = np.arange(W, dtype=np.float64) - float(W // 2)
    ys = np.arange(H, dtype=np.float64) - float(H // 2)
    val = (xs[None, None, :] * np.cos(thetas)[:, None, None]
           + ys[None, :, None] * np.sin(thetas)[:, None, None]) / rho_res
    ridx = _round_half_away(val).astype(np.int32) + numrho // 2  # [A, H, W]
    return ridx


@functools.lru_cache(maxsize=None)
def _ridx_padded(H, W, theta_res, rho_res, tp):
    """Padded device table [A, 1, Pp] int32; padded pixels point at a zero bin."""
    numangle, numrho = compute_hough_parameters(H, W, theta_res, rho_res)
    ridx = _rho_index_table_np(H, W, theta_res, rho_res).reshape(numangle, H * W)
    P = H * W
    Pp = int(math.ceil(P / tp) * tp)
    # Padding pixels get rho index == numrho: either it selects a zero-padded
    # hough column or (if numrho is a multiple of 128) it matches no row at all.
    pad = np.full((numangle, 1, Pp), numrho, dtype=np.int32)
    pad[:, 0, :P] = ridx
    return jnp.asarray(pad)


# ---------------------------------------------------------------------------
# Kernel: for one (pixel-tile, angle) grid step, build the one-hot selection
# tile in VMEM from ridx and accumulate h @ onehot into the resident output.
# ---------------------------------------------------------------------------
def _idht_kernel(ridx_ref, h_ref, o_ref):
    a = pl.program_id(1)

    @pl.when(a == 0)
    def _():
        o_ref[...] = jnp.zeros_like(o_ref)

    nr_p = h_ref.shape[2]          # padded numrho (multiple of 128)
    tp = ridx_ref.shape[2]         # pixel tile width (multiple of 128)

    ridx = ridx_ref[0]                                         # (1, tp) int32
    rho_iota = jax.lax.broadcasted_iota(jnp.int32, (nr_p, tp), 0)
    onehot = (rho_iota == ridx).astype(jnp.float32)            # (nr_p, tp) {0,1}

    h = h_ref[0]                                               # (NCp, nr_p) f32
    o_ref[...] += jnp.dot(h, onehot, preferred_element_type=jnp.float32)


def idht_forward(hough_map, H, W, theta_res=1.0, rho_res=1.0, tp=2048):
    """hough_map: [N, C, numangle, numrho] -> [N, C, H, W]."""
    N, C, numangle, numrho = hough_map.shape
    na, nr = compute_hough_parameters(H, W, theta_res, rho_res)
    assert (numangle, numrho) == (na, nr), "hough_map shape inconsistent with (H, W)"

    NC = N * C
    P = H * W

    NCp = int(math.ceil(NC / 8) * 8)               # sublane multiple
    NR_P = int(math.ceil(numrho / 128) * 128)      # lane multiple (matmul K dim)
    P128 = int(math.ceil(P / 128) * 128)
    tp = min(int(math.ceil(tp / 128) * 128), P128)  # lane-dense pixel tile
    Pp = int(math.ceil(P / tp) * tp)

    ridx_pad = _ridx_padded(H, W, theta_res, rho_res, tp)      # [A, 1, Pp] i32

    # hough as [A, NCp, NR_P] f32, zero-padded (exact).
    h = hough_map.reshape(NC, numangle, numrho).astype(jnp.float32).transpose(1, 0, 2)
    h_pad = jnp.pad(h, ((0, 0), (0, NCp - NC), (0, NR_P - numrho)))

    grid = (Pp // tp, numangle)   # pixel tiles (parallel) x angles (reduction)

    out_pad = pl.pallas_call(
        _idht_kernel,
        out_shape=jax.ShapeDtypeStruct((NCp, Pp), jnp.float32),
        grid_spec=pltpu.PrefetchScalarGridSpec(
            num_scalar_prefetch=0,
            grid=grid,
            in_specs=[
                pl.BlockSpec((1, 1, tp), lambda p, a: (a, 0, p)),       # ridx tile
                pl.BlockSpec((1, NCp, NR_P), lambda p, a: (a, 0, 0)),   # hough row
            ],
            out_specs=pl.BlockSpec((NCp, tp), lambda p, a: (0, p)),     # resident acc
        ),
        compiler_params=pltpu.CompilerParams(
            dimension_semantics=("parallel", "arbitrary"),
            vmem_limit_bytes=32 * 1024 * 1024,
        ),
    )(ridx_pad, h_pad)

    return out_pad[:NC, :P].reshape(N, C, H, W).astype(hough_map.dtype)


def _idht_reference(hough_map, H, W, theta_res=1.0, rho_res=1.0):
    """Pure-JAX gather reference for correctness check (same rho table)."""
    N, C, numangle, numrho = hough_map.shape
    ridx = jnp.asarray(_rho_index_table_np(H, W, theta_res, rho_res))  # [A,H,W]
    a_idx = jnp.arange(numangle)[:, None, None]
    gathered = hough_map[:, :, a_idx, ridx]                            # [N,C,A,H,W]
    return gathered.sum(axis=2)


if __name__ == "__main__":
    # Small deterministic example: H=W=16 image, batch=2, channels=4
    # => numangle=180, numrho=44.
    H, W = 16, 16
    N, C = 2, 4
    theta_res, rho_res = 1.0, 1.0
    numangle, numrho = compute_hough_parameters(H, W, theta_res, rho_res)

    key = jax.random.PRNGKey(0)
    hough_map = jax.random.normal(key, (N, C, numangle, numrho), dtype=jnp.float32)

    out = idht_forward(hough_map, H, W, theta_res, rho_res)
    out = jax.block_until_ready(out)

    assert out.shape == (N, C, H, W)
    ref = _idht_reference(hough_map, H, W, theta_res, rho_res)
    np.testing.assert_allclose(np.asarray(out), np.asarray(ref),
                               rtol=1e-4, atol=1e-4)
    print("KERNEL_OK")
</pallas_src>

<mosaic_0001>
module attributes {stable_mosaic.version = 11 : i64} {
  func.func @_idht_kernel(%arg0: i32, %arg1: i32, %arg2: memref<1x1x256xi32, #tpu.memory_space<vmem>>, %arg3: memref<1x8x128xf32, #tpu.memory_space<vmem>>, %arg4: memref<8x256xf32, #tpu.memory_space<vmem>>) attributes {dimension_semantics = [#tpu.dimension_semantics<parallel>, #tpu.dimension_semantics<arbitrary>], iteration_bounds = array<i64: 1, 180>, scalar_prefetch = 0 : i64, scratch_operands = 0 : i64, tpu.core_type = #tpu.core_type<tc>, window_params = [{transform_indices = @transform_0, window_bounds = array<i64: 1, 1, 256>}, {transform_indices = @transform_1, window_bounds = array<i64: 1, 8, 128>}, {transform_indices = @transform_2, window_bounds = array<i64: 8, 256>}]} {
    %c0_i32 = arith.constant 0 : i32
    %0 = arith.cmpi eq, %arg1, %c0_i32 : i32
    %1 = arith.extui %0 : i1 to i32
    %c0_i32_0 = arith.constant 0 : i32
    %2 = arith.cmpi ne, %1, %c0_i32_0 : i32
    scf.if %2 {
      %cst_10 = arith.constant 0.000000e+00 : f32
      %16 = vector.broadcast %cst_10 : f32 to vector<8x256xf32>
      %c0_11 = arith.constant 0 : index
      %c0_12 = arith.constant 0 : index
      %17 = vector.load %arg4[%c0_11, %c0_12] : memref<8x256xf32, #tpu.memory_space<vmem>>, vector<8x256xf32>
      tpu.vector_store %arg4[%c0_11, %c0_12], %16 {strides = array<i32>} : memref<8x256xf32, #tpu.memory_space<vmem>>, vector<8x256xf32>,
    } else {
    }
    %c0 = arith.constant 0 : index
    %c0_1 = arith.constant 0 : index
    %c0_2 = arith.constant 0 : index
    %3 = vector.load %arg2[%c0, %c0_1, %c0_2] : memref<1x1x256xi32, #tpu.memory_space<vmem>>, vector<1x1x256xi32>
    %4 = vector.shape_cast %3 : vector<1x1x256xi32> to vector<1x256xi32>
    %5 = tpu.iota {dimensions = array<i32: 0>} : vector<128x256xi32>
    %6 = vector.broadcast %4 : vector<1x256xi32> to vector<128x256xi32>
    %7 = arith.cmpi eq, %5, %6 : vector<128x256xi32>
    %8 = arith.extui %7 : vector<128x256xi1> to vector<128x256xi32>
    %9 = arith.sitofp %8 : vector<128x256xi32> to vector<128x256xf32>
    %c0_3 = arith.constant 0 : index
    %c0_4 = arith.constant 0 : index
    %c0_5 = arith.constant 0 : index
    %10 = vector.load %arg3[%c0_3, %c0_4, %c0_5] : memref<1x8x128xf32, #tpu.memory_space<vmem>>, vector<1x8x128xf32>
    %11 = vector.shape_cast %10 : vector<1x8x128xf32> to vector<8x128xf32>
    %c0_6 = arith.constant 0 : index
    %c0_7 = arith.constant 0 : index
    %12 = vector.load %arg4[%c0_6, %c0_7] : memref<8x256xf32, #tpu.memory_space<vmem>>, vector<8x256xf32>
    %cst = arith.constant dense<0.000000e+00> : vector<8x256xf32>
    %13 = tpu.matmul %11, %9, %cst {dimension_numbers = #tpu.dot_dimension_numbers<[1], [0], [0], [1], [0, 0, 1, 1], [], []>} : vector<8x128xf32>, vector<128x256xf32>, vector<8x256xf32> -> vector<8x256xf32>
    %14 = arith.addf %12, %13 : vector<8x256xf32>
    %c0_8 = arith.constant 0 : index
    %c0_9 = arith.constant 0 : index
    %15 = vector.load %arg4[%c0_8, %c0_9] : memref<8x256xf32, #tpu.memory_space<vmem>>, vector<8x256xf32>
    tpu.vector_store %arg4[%c0_8, %c0_9], %14 {strides = array<i32>} : memref<8x256xf32, #tpu.memory_space<vmem>>, vector<8x256xf32>,
    return
  }
  func.func @transform_0(%arg0: i32, %arg1: i32) -> (i32, i32, i32) {
    %c0_i32 = arith.constant 0 : i32
    %c0_i32_0 = arith.constant 0 : i32
    return %arg1, %c0_i32, %arg0 : i32, i32, i32
  }
  func.func @transform_1(%arg0: i32, %arg1: i32) -> (i32, i32, i32) {
    %c0_i32 = arith.constant 0 : i32
    %c0_i32_0 = arith.constant 0 : i32
    %c0_i32_1 = arith.constant 0 : i32
    return %arg1, %c0_i32, %c0_i32_0 : i32, i32, i32
  }
  func.func @transform_2(%arg0: i32, %arg1: i32) -> (i32, i32) {
    %c0_i32 = arith.constant 0 : i32
    %c0_i32_0 = arith.constant 0 : i32
    return %c0_i32, %arg0 : i32, i32
  }
}

</mosaic_0001>

<bundles_post_ra>
// kernel: tpu_custom_call.1
= control target key start
LH: loop header
LB: loop body
LE: loop exit
PB: predicated region body
PF: predicated region fallthrough
CT: control target
= control target key end

     0   :  { %7 = vsyncpa [#allocation3], 0  ;;  %s1058_s0 = inlined_call_operand.hbm [shape: s32[180,1,256], index: 0, kind: input, shape index: {}]   ;;  %s1059_s1 = inlined_call_operand.hbm [shape: f32[180,8,128], index: 1, kind: input, shape index: {}]   ;;  %s1060_s2 = inlined_call_operand.hbm [shape: f32[8,256], index: 2, kind: output, shape index: {}]  }
   0x1   :  { %9 = vsyncpa [#allocation3 + $0x1], 0 }
   0x2   :  { %10 = vsyncpa [#allocation6], 0 }
   0x3   :  { %12 = vsyncpa [#allocation6 + $0x1], 0 }
   0x4   :  { %13 = vsyncpa [#allocation4], 0  ;;  %s823_s9 = smov 0   ;;  %s825_s10 = smov 0  }
   0x5   :  { %s827_s11 = smov 0   ;;  %s829_s12 = smov 0  }
   0x6   :  { %s831_s13 = smov 0   ;;  %s833_s14 = smov 0  }
   0x7 LB: > { %s511_s15 = sadd.s32 4294967295, %s800_s14   ;;  %s28_s16 = sadd.s32 1, %s796_s13  ;;  %s800_s14 = sphi %s833_s14, %s19_s14   ;;  %s796_s13 = sphi %s831_s13, %s1070_s13   ;;  %s792_s12 = sphi %s829_s12, %s1069_s12   ;;  %s788_s11 = sphi %s827_s11, %s1068_s11   ;;  %s784_s10 = sphi %s825_s10, %s1067_s10   ;;  %s780_s9 = sphi %s823_s9, %s1066_s9  }
   0x8   : > { %p29_p0 = scmp.ge.s32.totalorder %s28_s16, 180  ;;  %s40_s17 = sadd.s32 1, %s788_s11 }
   0x9   : > { %p47_p1 = scmp.ne.s32.totalorder %s788_s11, %s784_s10  ;;  %p48_p2 = scmp.eq.s32.totalorder %s800_s14, 0 }
   0xa   : > { %s1072_s16 = smov (%p29_p0, %s28_s16), 0  ;;  %p53_p4 = scmp.ne.s32.totalorder %s784_s10, %s780_s9 }
   0xb   : > { %p859_p3 = por %p48_p2, %p47_p1  ;;  %s35_s19 = ssub.s32 %s796_s13, %s1072_s16 }
   0xc   : > { %p54_p5 = scmp.eq.s32.totalorder %s511_s15, 0  ;;  %p38_p6 = scmp.eq.s32.totalorder %s35_s19, 0 }
   0xd   : > { %p607_p8 = scmp.lt.s32.totalorder %s800_s14, 180  ;;  %s877_s22 = sand.u32 1, %s788_s11  }
   0xe   : > { %p868_p7 = por %p54_p5, %p53_p4  ;;  %s591_s23 = sshll.u32 %s796_s13, 5 }
   0xf   : > { %s874_s21 = scalar_select %p38_p6, %s788_s11, %s40_s17  }
  0x10   : > { %s514_s24 = sshll.u32 %s877_s22, 1  ;;  %s141_s27 = scalar_lea.hbm %s1058_s0, %s591_s23 }
  0x11   : > { %s133_s28 = scalar_lea.vmem [#allocation2], %s514_s24  ;;  %p886_p9 = pnand %p607_p8, %p859_p3 }
  0x12   : > { %s143_s29 = sshll.u32 %s133_s28, 4  ;;  %p519_p10 = scmp.ge.s32.totalorder %s800_s14, 1  ;;  %s144_s29 = int_to_ptr.vmem [resolvable:$true] %s143_s29 }
  0x13   : > { %p166_p11 = scmp.lt.s32.totalorder %s800_s14, 181  ;;  %s130_s3 = scalar_lea.sflag [#allocation3], %s877_s22 }
  0x14   : > { %p664_p12 = pneg %p886_p9  ;;  %s675_s4 = scalar_lea.vmem %s144_s29, 32 }
  0x15   : > { %p676_p13 = scmp.ne.s32.totalorder %s144_s29, %s675_s4  ;;  %s802_s5 = smov [#allocation2]  }
  0x16   : > { %s680_s6 = sshll.u32 %s802_s5, 4  ;;  %s681_s6 = int_to_ptr.vmem [resolvable:$false] %s680_s6 }
  0x17   : > { %p678_p0 = pnand %p676_p13, %p664_p12  ;;  %s682_s7 = scalar_lea.vmem %s681_s6, 64 }
  0x18   : > { %p683_p2 = scmp.lt.s32.totalorder %s144_s29, %s681_s6  ;;  %p684_p3 = scmp.lt.s32.totalorder %s682_s7, %s675_s4 }
  0x19   : > { %p679_p1 = pneg %p678_p0 }
  0x1a   : > { %p685_p4 = por %p684_p3, %p683_p2 }
  0x1c   : > { %p686_p5 = pnand %p685_p4, %p679_p1 }
  0x1e   : > { %689 = shalt.err (!%p686_p5)
}
  0x1f   : > { %603 = dma.hbm_to_vmem [thread:$0]  (!%p886_p9), %s141_s27, 32, %s144_s29, %s130_s3  }
  0x20   : > { %p904_p6 = pnand %p519_p10, %p166_p11  ;;  %s517_s9 = sshll.u32 %s877_s22, 3 }
  0x21   : > { %s518_s17 = sshll.u32 %s796_s13, 7  ;;  %s154_s24 = scalar_lea.vmem [#allocation5], %s517_s9 }
  0x22   : > { %s159_s23 = scalar_lea.hbm %s1059_s1, %s518_s17  ;;  %s161_s25 = sshll.u32 %s154_s24, 4  ;;  %s162_s25 = int_to_ptr.vmem [resolvable:$true] %s161_s25 }
  0x23   : > { %s151_s26 = scalar_lea.sflag [#allocation6], %s877_s22  ;;  %s703_s28 = scalar_lea.vmem %s162_s25, 128 }
  0x24   : > { %p704_p8 = scmp.ne.s32.totalorder %s162_s25, %s703_s28  ;;  %s803_s27 = smov [#allocation5]  }
  0x25   : > { %s708_s29 = sshll.u32 %s803_s27, 4  ;;  %s709_s29 = int_to_ptr.vmem [resolvable:$false] %s708_s29 }
  0x26   : > { %p706_p13 = pnand %p704_p8, %p664_p12  ;;  %s710_s3 = scalar_lea.vmem %s709_s29, 256 }
  0x27   : > { %p711_p10 = scmp.lt.s32.totalorder %s162_s25, %s709_s29  ;;  %p712_p11 = scmp.lt.s32.totalorder %s710_s3, %s703_s28 }
  0x28   : > { %p707_p0 = pneg %p706_p13 }
  0x29   : > { %p713_p1 = por %p712_p11, %p711_p10 }
  0x2b   : > { %p714_p2 = pnand %p713_p1, %p707_p0 }
  0x2d   : > { %717 = shalt.err (!%p714_p2)
}
  0x2e   : > { %606 = dma.hbm_to_vmem [thread:$0]  (!%p886_p9), %s159_s23, 128, %s162_s25, %s151_s26  }
  0x2f   : > { %170 = sbr.rel (%p904_p6) target bundleno = 308 (0x134), region = 28  ;;  %s172_s22 = sand.u32 (!%p904_p6), 1, %s784_s10  }
  0x30   : > { %s520_s4 = sshll.u32 (!%p904_p6), %s172_s22, 1  ;;  %s173_s5 = scalar_lea.sflag (!%p904_p6), [#allocation3], %s172_s22 }
  0x31   : > { %s176_s6 = scalar_lea.vmem (!%p904_p6), [#allocation2], %s520_s4 }
  0x34   : > { %767 = dma.done.wait (%p868_p7), %s173_s5, 32  }
  0x35   : > { %769 = vsyncadd (%p868_p7), %s173_s5, 4294967264  ;;  %s521_s7 = sshll.u32 %s172_s22, 3  ;;  %s182_s9 = scalar_lea.sflag [#allocation6], %s172_s22 }
  0x36   : > { %s926_s17 = scalar_lea.vmem [#allocation5], %s521_s7 }
  0x37   : > { %771 = dma.done.wait (%p868_p7), %s182_s9, 128  }
  0x38   : > { %773 = vsyncadd (%p868_p7), %s182_s9, 4294967168  ;;  %p522_p9 = scmp.ne.s32.totalorder %s792_s12, 0 }
  0x3a   : > { %211 = sbr.rel (%p522_p9) target bundleno = 65 (0x41), region = 40 }
  0x3f   : > { %v804_v0 = vmov 0.0  }
  0x40   : > { %212 = vst [vmem:[#allocation7] sm:$0xff] %v804_v0  ;;  %213 = vst [vmem:[#allocation7 + $0x8] sm:$0xff] %v804_v0 }
  0x41 PF: > { %v215_v1 = vlaneseq  ;;  %v805_v2 = vmov 0.0   ;;  %v214_v4 = vld [vmem:[%s176_s6] sm:$0x3]  ;;  %v806_v13 = vmov 1.0   ;;  %v336_v25 = vld [vmem:[%s926_s17] sm:$0xff]  ;;  %s807_s12 = smov [#allocation7]  }
  0x42   : > { %403 = vmatprep.mubr.f32.mxu0 %v805_v2  ;;  %s424_s20 = sshll.u32 %s807_s12, 4  ;;  %p1025_p7 = scmp.eq.s32.totalorder %s511_s15, 179  ;;  %s425_s20 = int_to_ptr.vmem [resolvable:$true] %s424_s20 }
  0x43   : > { %v933_v3 = vshrl.u32 %v215_v1, 7  ;;  %s718_s8 = scalar_lea.vmem %s425_s20, 256  ;;  %p725_p5 = scmp.lt.s32.totalorder %s425_s20, %s425_s20 }
  0x44   : > { %p719_p12 = scmp.ne.s32.totalorder %s425_s20, %s718_s8  ;;  %p726_p6 = scmp.lt.s32.totalorder %s718_s8, %s718_s8 }
  0x45   : > { %v231_v5 = vadd.s32 120, %v933_v3  ;;  %v238_v6 = vsub.s32 1, %v933_v3  ;;  %v234_v7 = vsub.s32 0, %v933_v3  ;;  %v230_v8 = vadd.s32 112, %v933_v3 }
  0x46   : > { %v229_v11 = vadd.s32 104, %v933_v3  ;;  %v228_v12 = vadd.s32 96, %v933_v3  ;;  %v227_v14 = vadd.s32 88, %v933_v3  ;;  %v226_v15 = vadd.s32 80, %v933_v3  ;;  %p720_p3 = pnand %p719_p12, %p1025_p7  ;;  %p727_p8 = por %p726_p6, %p725_p5 }
  0x47   : > { %v939_v9 = vrot.slane %v214_v4, %v238_v6  ;;  %v941_v10 = vrot.slane %v214_v4, %v234_v7  ;;  %v225_v16 = vadd.s32 72, %v933_v3  ;;  %v224_v17 = vadd.s32 64, %v933_v3  ;;  %v337_v26 = vld [vmem:[#allocation7] sm:$0xff]  ;;  %v338_v28 = vld [vmem:[#allocation7 + $0x8] sm:$0xff] }
  0x48   : > { %v223_v18 = vadd.s32 56, %v933_v3  ;;  %v222_v19 = vadd.s32 48, %v933_v3  ;;  %v221_v20 = vadd.s32 40, %v933_v3  ;;  %v220_v21 = vadd.s32 32, %v933_v3  ;;  %p721_p4 = pneg %p720_p3 }
  0x49   : > { %vm271_vm0 = vcmp.eq.s32.totalorder %v231_v5, %v939_v9  ;;  %vm270_vm1 = vcmp.eq.s32.totalorder %v231_v5, %v941_v10  ;;  %vm269_vm2 = vcmp.eq.s32.totalorder %v230_v8, %v939_v9  ;;  %vm268_vm3 = vcmp.eq.s32.totalorder %v230_v8, %v941_v10 }
  0x4a   : > { %555 = vmatprep.subr.msk.mxu0 %vm271_vm0, %v806_v13  ;;  %vm267_vm4 = vcmp.eq.s32.totalorder %v229_v11, %v939_v9  ;;  %vm266_vm5 = vcmp.eq.s32.totalorder %v229_v11, %v941_v10  ;;  %vm265_vm6 = vcmp.eq.s32.totalorder %v228_v12, %v939_v9  ;;  %vm264_vm7 = vcmp.eq.s32.totalorder %v228_v12, %v941_v10  ;;  %p728_p13 = pnand %p727_p8, %p721_p4 }
  0x4b   : > { %556 = vmatpush1.msk.msra.mxu0 %vm270_vm1, %v806_v13  ;;  %vm263_vm8 = vcmp.eq.s32.totalorder %v227_v14, %v939_v9  ;;  %vm262_vm9 = vcmp.eq.s32.totalorder %v227_v14, %v941_v10  ;;  %vm261_vm10 = vcmp.eq.s32.totalorder %v226_v15, %v939_v9  ;;  %vm260_vm11 = vcmp.eq.s32.totalorder %v226_v15, %v941_v10 }
  0x4c   : > { %557 = vmatprep.subr.msk.mxu0 %vm269_vm2, %v806_v13  ;;  %vm259_vm12 = vcmp.eq.s32.totalorder %v225_v16, %v939_v9  ;;  %vm258_vm13 = vcmp.eq.s32.totalorder %v225_v16, %v941_v10  ;;  %vm257_vm14 = vcmp.eq.s32.totalorder %v224_v17, %v939_v9  ;;  %vm256_vm15 = vcmp.eq.s32.totalorder %v224_v17, %v941_v10 }
  0x4d   : > { %558 = vmatpush1.msk.msra.mxu0 %vm268_vm3, %v806_v13  ;;  %vm255_vm0 = vcmp.eq.s32.totalorder %v223_v18, %v939_v9  ;;  %vm254_vm1 = vcmp.eq.s32.totalorder %v223_v18, %v941_v10  ;;  %vm253_vm2 = vcmp.eq.s32.totalorder %v222_v19, %v939_v9  ;;  %vm252_vm3 = vcmp.eq.s32.totalorder %v222_v19, %v941_v10 }
  0x4e   : > { %559 = vmatprep.subr.msk.mxu0 %vm267_vm4, %v806_v13  ;;  %vm251_vm4 = vcmp.eq.s32.totalorder %v221_v20, %v939_v9  ;;  %v219_v22 = vadd.s32 24, %v933_v3  ;;  %v218_v23 = vadd.s32 16, %v933_v3  ;;  %v217_v24 = vadd.s32 8, %v933_v3 }
  0x4f   : > { %560 = vmatpush1.msk.msra.mxu0 %vm266_vm5, %v806_v13  ;;  %vm250_vm5 = vcmp.eq.s32.totalorder %v221_v20, %v941_v10 }
  0x50   : > { %561 = vmatprep.subr.msk.mxu0 %vm265_vm6, %v806_v13  ;;  %vm249_vm6 = vcmp.eq.s32.totalorder %v220_v21, %v939_v9 }
  0x51   : > { %562 = vmatpush1.msk.msra.mxu0 %vm264_vm7, %v806_v13  ;;  %vm248_vm7 = vcmp.eq.s32.totalorder %v220_v21, %v941_v10 }
  0x52   : > { %563 = vmatprep.subr.msk.mxu0 %vm263_vm8, %v806_v13  ;;  %vm247_vm8 = vcmp.eq.s32.totalorder %v219_v22, %v939_v9 }
  0x53   : > { %564 = vmatpush1.msk.msra.mxu0 %vm262_vm9, %v806_v13  ;;  %vm246_vm9 = vcmp.eq.s32.totalorder %v219_v22, %v941_v10 }
  0x54   : > { %565 = vmatprep.subr.msk.mxu0 %vm261_vm10, %v806_v13  ;;  %vm245_vm10 = vcmp.eq.s32.totalorder %v218_v23, %v939_v9 }
  0x55   : > { %566 = vmatpush1.msk.msra.mxu0 %vm260_vm11, %v806_v13  ;;  %vm244_vm11 = vcmp.eq.s32.totalorder %v218_v23, %v941_v10 }
  0x56   : > { %567 = vmatprep.subr.msk.mxu0 %vm259_vm12, %v806_v13  ;;  %vm243_vm12 = vcmp.eq.s32.totalorder %v217_v24, %v939_v9 }
  0x57   : > { %568 = vmatpush1.msk.msra.mxu0 %vm258_vm13, %v806_v13  ;;  %vm242_vm13 = vcmp.eq.s32.totalorder %v217_v24, %v941_v10 }
  0x58   : > { %569 = vmatprep.subr.msk.mxu0 %vm257_vm14, %v806_v13  ;;  %vm241_vm14 = vcmp.eq.s32.totalorder %v933_v3, %v939_v9 }
  0x59   : > { %570 = vmatpush1.msk.msra.mxu0 %vm256_vm15, %v806_v13  ;;  %vm240_vm15 = vcmp.eq.s32.totalorder %v933_v3, %v941_v10 }
  0x5a   : > { %571 = vmatprep.subr.msk.mxu0 %vm255_vm0, %v806_v13 }
  0x5b   : > { %572 = vmatpush1.msk.msra.mxu0 %vm254_vm1, %v806_v13 }
  0x5c   : > { %573 = vmatprep.subr.msk.mxu0 %vm253_vm2, %v806_v13 }
  0x5d   : > { %574 = vmatpush1.msk.msra.mxu0 %vm252_vm3, %v806_v13 }
  0x5e   : > { %575 = vmatprep.subr.msk.mxu0 %vm251_vm4, %v806_v13 }
  0x5f   : > { %576 = vmatpush1.msk.msra.mxu0 %vm250_vm5, %v806_v13 }
  0x60   : > { %577 = vmatprep.subr.msk.mxu0 %vm249_vm6, %v806_v13 }
  0x61   : > { %578 = vmatpush1.msk.msra.mxu0 %vm248_vm7, %v806_v13 }
  0x62   : > { %579 = vmatprep.subr.msk.mxu0 %vm247_vm8, %v806_v13 }
  0x63   : > { %580 = vmatpush1.msk.msra.mxu0 %vm246_vm9, %v806_v13 }
  0x64   : > { %581 = vmatprep.subr.msk.mxu0 %vm245_vm10, %v806_v13 }
  0x65   : > { %582 = vmatpush1.msk.msra.mxu0 %vm244_vm11, %v806_v13 }
  0x66   : > { %583 = vmatprep.subr.msk.mxu0 %vm243_vm12, %v806_v13 }
  0x67   : > { %584 = vmatpush1.msk.msra.mxu0 %vm242_vm13, %v806_v13 }
  0x68   : > { %585 = vmatprep.subr.msk.mxu0 %vm241_vm14, %v806_v13 }
  0x69   : > { %586 = vmatpush1.msk.msra.mxu0 %vm240_vm15, %v806_v13 }
  0x6a   : > { %404 = vmatmul.mubr.f32.vlgmr.msra.gmra.mxu0 %v336_v25 }
 0x12a   : > { %v405_v27 = vpop.f32.mrf.mxu0 }
 0x12b   : > { %v410_v29 = vadd.f32 %v405_v27, %v337_v26 }
 0x12c   : > { %v407_v30 = vpop.f32.mrf.mxu0 }
 0x12d   : > { %412 = vst [vmem:[#allocation7] sm:$0xff] %v410_v29  ;;  %v411_v31 = vadd.f32 %v407_v30, %v338_v28 }
 0x12f   : > { %413 = vst [vmem:[#allocation7 + $0x8] sm:$0xff] %v411_v31 }
 0x130   : > { %731 = shalt.err (!%p728_p13)
}
 0x131   : > { %597 = dma.vmem_to_hbm [thread:$0]  (%p1025_p7), %s425_s20, 256, %s1060_s2, [#allocation4]  }
 0x132   : > { %775 = dma.done.wait (%p1025_p7), [#allocation4], 256  }
 0x133   : > { %777 = vsyncadd (%p1025_p7), [#allocation4], 4294967040 }
 0x134 PF: > { %s19_s14 = sadd.s32 1, %s800_s14   ;;  %s1066_s9 = smov %s784_s10 }
 0x135   : > { %p16_p0 = scmp.ge.s32.totalorder %s19_s14, 182   ;;  %s1067_s10 = smov %s788_s11 }
 0x136   : > { %s1068_s11 = smov %s874_s21  ;;  %s1069_s12 = smov %s796_s13 }
 0x137   : > { %s1070_s13 = smov %s1072_s16  ;;  %18 = sbr.rel (!%p16_p0) target bundleno = 7 (0x7), region = 83 }
 0x13c   :  { %437 = vsyncpa [#allocation3], 1 }
 0x13d   :  { %439 = vsyncpa [#allocation3 + $0x1], 1 }
 0x13e   :  { %440 = vsyncpa [#allocation6], 1 }
 0x13f   :  { %442 = vsyncpa [#allocation6 + $0x1], 1 }
 0x140   :  { %443 = vsyncpa [#allocation4], 1 }
 0x141   :  { %445 = vsyncpa [#allocation4 + $0x1], 1 }

</bundles_post_ra>
